<compile_context>
chip_gen: v5e
topology: v5e:2x2
jax: 0.10.0
libtpu: 0.0.40
codegen_flags: <defaults>
</compile_context>

<pallas_src>
import jax
import jax.numpy as jnp
from jax.experimental import pallas as pl
from jax.experimental.pallas import tpu as pltpu


# ----------------------------------------------------------------------------
# Kernel body: elementwise add of the current VMEM tile.
# ----------------------------------------------------------------------------
def _add_kernel(bias_ref, ab_ref, out_ref):
    out_ref[...] = bias_ref[...] + ab_ref[...]


# ----------------------------------------------------------------------------
# Sizing helpers (all trace-time Python, no runtime cost).
# ----------------------------------------------------------------------------
def _tpu_generation():
    """Best-effort TPU generation from the device kind string."""
    try:
        kind = jax.devices()[0].device_kind.lower()
    except Exception:
        return "unknown"
    if "v5 lite" in kind or "v5e" in kind or "v5lite" in kind:
        return "v5e"
    if "v6" in kind:
        return "v6e"
    if "7" in kind:  # "TPU7x", "TPU v7", ...
        return "v7x"
    return "unknown"


def _block_budget(gen):
    """(max_block_bytes, vmem_limit_bytes, min_grid_steps) per generation."""
    if gen == "v7x":
        # 64 MiB physical VMEM per TC: 6 x 8 MiB = 48 MiB + headroom = 56 MiB.
        # 2 TensorCores per chip -> force >= 2 grid steps for megacore sharding.
        return 8 << 20, 56 << 20, 2
    if gen == "v6e":
        # 128 MiB physical; raise scoped limit above the 32 MiB default.
        return 8 << 20, 64 << 20, 1
    if gen == "v5e":
        # Slow HBM: per-step overhead already small; keep 2 MiB blocks but
        # raise the scoped limit slightly above the 16 MiB default for headroom.
        return 2 << 20, 20 << 20, 1
    # Unknown generation: conservative middle ground (safe on every chip).
    return 4 << 20, 32 << 20, 1


def _sublane_multiple(dtype):
    """Min sublane multiple for a non-full-extent tile: 8(f32)/16(bf16)/32(i8)."""
    itemsize = jnp.dtype(dtype).itemsize
    return max(8, 32 // max(itemsize, 1))


def _choose_lane_width(n):
    """Largest multiple of 128 (capped at 4096) dividing n (n is guaranteed
    to be a multiple of 128 by construction)."""
    for lanes in (4096, 2048, 1024, 512, 256, 128):
        if n % lanes == 0:
            return lanes
    raise AssertionError("padded element count must be a multiple of 128")


def _largest_aligned_divisor(rows, limit, sub):
    """Largest d <= limit with d % sub == 0 and rows % d == 0, or None."""
    d = (limit // sub) * sub
    while d >= sub:
        if rows % d == 0:
            return d
        d -= sub
    return None


def _choose_tiling(rows, max_rows, sub, min_grid):
    """Pick (tile_rows, grid_steps): layout-legal, VMEM-sized, no ragged tail
    when possible, and >= min_grid steps for megacore sharding."""
    if rows <= max_rows:
        if min_grid > 1 and rows >= min_grid * sub:
            d = _largest_aligned_divisor(rows, rows // min_grid, sub)
            if d is not None:
                return d, rows // d
        return rows, 1  # full extent -> always layout-legal
    d = _largest_aligned_divisor(rows, max_rows, sub)
    if d is not None:
        return d, rows // d
    # No even divisor: aligned tile + one ragged tail block (Pallas masks it).
    tile = max(sub, (max_rows // sub) * sub)
    return tile, pl.cdiv(rows, tile)


# ----------------------------------------------------------------------------
# Forward wrapper: result = bias + ab_padded via a lane-dense Pallas kernel.
# ----------------------------------------------------------------------------
def add_bias_to_ab_forward(bias, ab_padded):
    assert bias.shape == ab_padded.shape
    assert bias.dtype == ab_padded.dtype
    orig_shape = bias.shape
    dtype = bias.dtype
    itemsize = jnp.dtype(dtype).itemsize
    n = bias.size

    gen = _tpu_generation()
    max_block_bytes, vmem_limit, min_grid = _block_budget(gen)

    # Clamp the scoped-VMEM request under the physical capacity if queryable.
    try:
        phys = pltpu.get_tpu_info().vmem_capacity_bytes
        vmem_limit = min(vmem_limit, phys - (4 << 20))
    except Exception:
        pass

    sub = _sublane_multiple(dtype)

    # Flatten (pure metadata reshape on contiguous arrays) and zero-pad the
    # flat view so it factors into a lane-dense (rows, lanes) 2D layout.
    pad_unit = 128 * sub
    n_pad = ((n + pad_unit - 1) // pad_unit) * pad_unit
    bias_flat = bias.reshape(-1)
    ab_flat = ab_padded.reshape(-1)
    if n_pad != n:
        pad = n_pad - n
        bias_flat = jnp.pad(bias_flat, (0, pad))
        ab_flat = jnp.pad(ab_flat, (0, pad))

    lanes = _choose_lane_width(n_pad)
    rows = n_pad // lanes

    max_rows = max(sub, max_block_bytes // (lanes * itemsize))
    tile_rows, grid_steps = _choose_tiling(rows, max_rows, sub, min_grid)

    spec = pl.BlockSpec((tile_rows, lanes), lambda i: (i, 0))
    cost = pl.CostEstimate(
        flops=n, transcendentals=0, bytes_accessed=3 * n * itemsize
    )

    out2 = pl.pallas_call(
        _add_kernel,
        out_shape=jax.ShapeDtypeStruct((rows, lanes), dtype),
        grid_spec=pltpu.PrefetchScalarGridSpec(
            num_scalar_prefetch=0,
            grid=(grid_steps,),
            in_specs=[spec, spec],
            out_specs=spec,
        ),
        compiler_params=pltpu.CompilerParams(
            dimension_semantics=("parallel",),  # lets v7x shard rows over 2 TCs
            vmem_limit_bytes=vmem_limit,
        ),
        cost_estimate=cost,
    )(bias_flat.reshape(rows, lanes), ab_flat.reshape(rows, lanes))

    out_flat = out2.reshape(-1)
    if n_pad != n:
        out_flat = out_flat[:n]
    return out_flat.reshape(orig_shape)


# ----------------------------------------------------------------------------
# Module-parameter construction (mirrors add_bias_to_AB.__init__ in JAX).
# ----------------------------------------------------------------------------
def make_module_params(key, ab, extra_freq_scaling=1):
    _, _, x_cutoff, y_cutoff = ab.shape
    # F.pad(AB, (0, s*y_cutoff, 0, s*x_cutoff)): pad right of W, bottom of H.
    ab_padded = jnp.pad(
        ab,
        ((0, 0), (0, 0),
         (0, extra_freq_scaling * x_cutoff),
         (0, extra_freq_scaling * y_cutoff)),
        mode="constant",
        constant_values=0.0,
    )
    # bias = rand_like(padded_AB) / padded_AB.numel()  (uniform [0,1) / numel)
    bias = jax.random.uniform(key, ab_padded.shape, dtype=ab_padded.dtype)
    bias = bias / ab_padded.size
    return bias, ab_padded


if __name__ == "__main__":
    key = jax.random.PRNGKey(0)
    k_ab, k_bias = jax.random.split(key)

    # Small shapes consistent with the module: AB is [2, 4, 8, 8];
    # extra_freq_scaling=1 pads it to [2, 4, 16, 16].
    ab = jax.random.normal(k_ab, (2, 4, 8, 8), dtype=jnp.float32)
    bias, ab_padded = make_module_params(k_bias, ab, extra_freq_scaling=1)

    result = add_bias_to_ab_forward(bias, ab_padded)
    result = jax.block_until_ready(result)

    # Reference check (plain JAX elementwise add).
    ref = bias + ab_padded
    assert result.shape == (2, 4, 16, 16)
    assert jnp.allclose(result, ref, atol=1e-6), "mismatch vs reference"

    print("KERNEL_OK")
</pallas_src>

<mosaic_0001>
module attributes {stable_mosaic.version = 11 : i64} {
  func.func @_add_kernel(%arg0: i32, %arg1: memref<1x2048xf32, #tpu.memory_space<vmem>>, %arg2: memref<1x2048xf32, #tpu.memory_space<vmem>>, %arg3: memref<1x2048xf32, #tpu.memory_space<vmem>>) attributes {dimension_semantics = [#tpu.dimension_semantics<parallel>], iteration_bounds = array<i64: 1>, scalar_prefetch = 0 : i64, scratch_operands = 0 : i64, tpu.core_type = #tpu.core_type<tc>, window_params = [{transform_indices = @transform_0, window_bounds = array<i64: 1, 2048>}, {transform_indices = @transform_1, window_bounds = array<i64: 1, 2048>}, {transform_indices = @transform_2, window_bounds = array<i64: 1, 2048>}]} {
    %c0 = arith.constant 0 : index
    %c0_0 = arith.constant 0 : index
    %0 = vector.load %arg1[%c0, %c0_0] : memref<1x2048xf32, #tpu.memory_space<vmem>>, vector<1x2048xf32>
    %c0_1 = arith.constant 0 : index
    %c0_2 = arith.constant 0 : index
    %1 = vector.load %arg2[%c0_1, %c0_2] : memref<1x2048xf32, #tpu.memory_space<vmem>>, vector<1x2048xf32>
    %2 = arith.addf %0, %1 : vector<1x2048xf32>
    %c0_3 = arith.constant 0 : index
    %c0_4 = arith.constant 0 : index
    %3 = vector.load %arg3[%c0_3, %c0_4] : memref<1x2048xf32, #tpu.memory_space<vmem>>, vector<1x2048xf32>
    tpu.vector_store %arg3[%c0_3, %c0_4], %2 {strides = array<i32>} : memref<1x2048xf32, #tpu.memory_space<vmem>>, vector<1x2048xf32>,
    return
  }
  func.func @transform_0(%arg0: i32) -> (i32, i32) {
    %c0_i32 = arith.constant 0 : i32
    %c0_i32_0 = arith.constant 0 : i32
    return %arg0, %c0_i32 : i32, i32
  }
  func.func @transform_1(%arg0: i32) -> (i32, i32) {
    %c0_i32 = arith.constant 0 : i32
    %c0_i32_0 = arith.constant 0 : i32
    return %arg0, %c0_i32 : i32, i32
  }
  func.func @transform_2(%arg0: i32) -> (i32, i32) {
    %c0_i32 = arith.constant 0 : i32
    %c0_i32_0 = arith.constant 0 : i32
    return %arg0, %c0_i32 : i32, i32
  }
}

</mosaic_0001>

<bundles_post_ra>
// kernel: tpu_custom_call.1
= control target key start
LH: loop header
LB: loop body
LE: loop exit
PB: predicated region body
PF: predicated region fallthrough
CT: control target
= control target key end

     0   :  { %7 = vsyncpa [#allocation3], 0  ;;  %s174_s0 = inlined_call_operand.hbm [shape: f32[1,2048], index: 0, kind: input, shape index: {}]   ;;  %s175_s1 = inlined_call_operand.hbm [shape: f32[1,2048], index: 1, kind: input, shape index: {}]   ;;  %s176_s2 = inlined_call_operand.hbm [shape: f32[1,2048], index: 2, kind: output, shape index: {}]  }
   0x1   :  { %8 = vsyncpa [#allocation6], 0 }
   0x2   :  { %9 = vsyncpa [#allocation4], 0  ;;  %s15_s11 = sshll.u32 %s174_s0, 4  ;;  %s147_s12 = smov [#allocation2]   ;;  %s16_s11 = int_to_ptr.hbm [resolvable:$true] %s15_s11 }
   0x3   :  { %s17_s13 = sshll.u32 %s147_s12, 4  ;;  %s26_s16 = sshll.u32 %s175_s1, 4  ;;  %s18_s13 = int_to_ptr.vmem [resolvable:$true] %s17_s13  ;;  %s27_s16 = int_to_ptr.hbm [resolvable:$true] %s26_s16 }
   0x4   :  { %20 = dma.hbm_to_vmem [thread:$0]  %s16_s11, 256, %s18_s13, [#allocation3]  }
   0x5   :  { %s148_s17 = smov [#allocation5]  }
   0x6   :  { %s28_s18 = sshll.u32 %s148_s17, 4  ;;  %s29_s18 = int_to_ptr.vmem [resolvable:$true] %s28_s18 }
   0x7   :  { %31 = dma.hbm_to_vmem [thread:$0]  %s27_s16, 256, %s29_s18, [#allocation6]  }
   0x8   :  { %141 = dma.done.wait [#allocation3], 256  }
   0x9   :  { %142 = vsyncadd [#allocation3], 4294967040 }
   0xa   :  { %143 = dma.done.wait [#allocation6], 256  }
   0xb   :  { %144 = vsyncadd [#allocation6], 4294967040  ;;  %s149_s19 = smov [#allocation7]   ;;  %s55_s22 = sshll.u32 %s176_s2, 4  ;;  %v40_v0 = vld [vmem:[#allocation2] sm:$0xff]  ;;  %v42_v1 = vld [vmem:[#allocation5] sm:$0xff]  ;;  %s56_s22 = int_to_ptr.hbm [resolvable:$true] %s55_s22 }
   0xc   :  { %s53_s0 = sshll.u32 %s149_s19, 4  ;;  %v41_v2 = vld [vmem:[#allocation2 + $0x8] sm:$0xff]  ;;  %v44_v3 = vadd.f32 %v42_v1, %v40_v0  ;;  %v43_v4 = vld [vmem:[#allocation5 + $0x8] sm:$0xff]  ;;  %s54_s0 = int_to_ptr.vmem [resolvable:$true] %s53_s0 }
   0xd   :  { %v45_v5 = vadd.f32 %v43_v4, %v41_v2 }
   0xe   :  { %46 = vst [vmem:[#allocation7] sm:$0xff] %v44_v3 }
   0xf   :  { %47 = vst [vmem:[#allocation7 + $0x8] sm:$0xff] %v45_v5 }
  0x10   :  { %58 = dma.vmem_to_hbm [thread:$0]  %s54_s0, 256, %s56_s22, [#allocation4]  }
  0x11   :  { %145 = dma.done.wait [#allocation4], 256  }
  0x12   :  { %146 = vsyncadd [#allocation4], 4294967040 }
  0x13   :  { %63 = vsyncpa [#allocation3], 1 }
  0x14   :  { %64 = vsyncpa [#allocation6], 1 }
  0x15   :  { %65 = vsyncpa [#allocation4], 1 }

</bundles_post_ra>
